<compile_context>
chip_gen: v6e
topology: v6e:2x2x1
jax: 0.10.0
libtpu: 0.0.40
codegen_flags: <defaults>
</compile_context>

<pallas_src>
import jax
import jax.numpy as jnp
from jax.experimental import pallas as pl
from jax.experimental.pallas import tpu as pltpu


_LANES = 128
# Below this many bytes per operand, pallas_call launch overhead dominates and
# a fused XLA elementwise op is strictly faster.
_FAST_PATH_BYTES = 256 * 1024


def _make_qux_kernel(x_const):
    """Builds the elementwise kernel with the module constant `x` baked in."""

    def kernel(a_ref, b_ref, o_ref):
        # HBM-streaming bound: do not micro-optimize the two subtractions.
        o_ref[...] = (a_ref[...] - b_ref[...] - x_const).astype(o_ref.dtype)

    return kernel


def qux_forward(a, b, x, *, row_block=4096, force_pallas=False):
    """Computes a - b - x (Qux.forward) with the hot path in a Pallas kernel."""
    assert a.shape == b.shape and a.dtype == b.dtype
    orig_shape = a.shape
    total = a.size

    # Match the constant's type kind to the inputs so the in-kernel subtraction
    # does not promote past o_ref's dtype (handles bf16 / integer inputs too).
    if jnp.issubdtype(a.dtype, jnp.floating):
        x_const = float(x)
    elif jnp.issubdtype(a.dtype, jnp.integer):
        x_const = int(x)
    else:
        x_const = x

    # Tiny-input fast path: fused XLA elementwise beats any custom call here.
    nbytes = total * a.dtype.itemsize
    if not force_pallas and nbytes < _FAST_PATH_BYTES:
        return (a - b - x_const).astype(a.dtype)

    # Lane-dense layout: flatten, pad to a multiple of 128, view as (-1, 128)
    # so every store is a full unmasked vst regardless of the original last dim.
    pad = (-total) % _LANES
    a_flat = a.reshape(-1)
    b_flat = b.reshape(-1)
    if pad:
        a_flat = jnp.pad(a_flat, (0, pad))
        b_flat = jnp.pad(b_flat, (0, pad))
    a2 = a_flat.reshape(-1, _LANES)
    b2 = b_flat.reshape(-1, _LANES)
    rows = a2.shape[0]

    kernel = _make_qux_kernel(x_const)
    out_shape = jax.ShapeDtypeStruct((rows, _LANES), a.dtype)

    if rows <= row_block:
        # Single-shot path: one full-array VMEM block, no grid machinery.
        out2 = pl.pallas_call(
            kernel,
            out_shape=out_shape,
            in_specs=[
                pl.BlockSpec(memory_space=pltpu.MemorySpace.VMEM),
                pl.BlockSpec(memory_space=pltpu.MemorySpace.VMEM),
            ],
            out_specs=pl.BlockSpec(memory_space=pltpu.MemorySpace.VMEM),
        )(a2, b2)
    else:
        # Streaming path: 2 MiB blocks (row_block=4096 x 128 lanes x f32),
        # 3 operands x 2 buffers = 12 MiB live -> fits v5e's 16 MiB scoped
        # default and v7x's 64 MiB physical VMEM, while amortizing the ~0.35 us
        # per-step overhead. cdiv grid handles ragged row counts (Pallas masks
        # the final partial block), so no giant-single-block fallback exists.
        grid = (pl.cdiv(rows, row_block),)
        out2 = pl.pallas_call(
            kernel,
            out_shape=out_shape,
            grid=grid,
            in_specs=[
                pl.BlockSpec((row_block, _LANES), lambda i: (i, 0)),
                pl.BlockSpec((row_block, _LANES), lambda i: (i, 0)),
            ],
            out_specs=pl.BlockSpec((row_block, _LANES), lambda i: (i, 0)),
            compiler_params=pltpu.CompilerParams(
                dimension_semantics=("parallel",)
            ),
        )(a2, b2)

    out_flat = out2.reshape(-1)
    if pad:
        out_flat = out_flat[:total]
    return out_flat.reshape(orig_shape)


if __name__ == "__main__":
    key = jax.random.PRNGKey(0)
    ka, kb, kc, kd = jax.random.split(key, 4)

    x_const = 3.0  # the `x` passed to Qux.__init__ (deterministic constant)

    # Actual Qux-sized workload; force the Pallas path so the kernel runs
    # (the default dispatch would take the fused-XLA fast path at 8 KiB).
    shape = (2, 4, 16, 16)  # (N, C, H, W)
    a = jax.random.normal(ka, shape, dtype=jnp.float32)
    b = jax.random.normal(kb, shape, dtype=jnp.float32)
    out = jax.block_until_ready(qux_forward(a, b, x_const, force_pallas=True))
    ref = a - b - x_const
    assert out.shape == shape
    assert jnp.allclose(out, ref, atol=1e-6), "mismatch vs reference (aligned)"

    # Odd-sized input exercises the pad-to-128-lanes path.
    shape2 = (3, 5, 7)
    a2 = jax.random.normal(kc, shape2, dtype=jnp.float32)
    b2 = jax.random.normal(kd, shape2, dtype=jnp.float32)
    out2 = jax.block_until_ready(qux_forward(a2, b2, x_const, force_pallas=True))
    assert out2.shape == shape2
    assert jnp.allclose(out2, a2 - b2 - x_const, atol=1e-6), "mismatch (ragged)"

    # Default dispatch (fast path at this size) must agree as well.
    out3 = jax.block_until_ready(qux_forward(a, b, x_const))
    assert jnp.allclose(out3, ref, atol=1e-6), "mismatch vs reference (fast path)"

    print("KERNEL_OK")
</pallas_src>

<mosaic_0001>
module attributes {stable_mosaic.version = 11 : i64} {
  func.func @kernel(%arg0: memref<16x128xf32, #tpu.memory_space<vmem>>, %arg1: memref<16x128xf32, #tpu.memory_space<vmem>>, %arg2: memref<16x128xf32, #tpu.memory_space<vmem>>) attributes {dimension_semantics = [], scalar_prefetch = 0 : i64, scratch_operands = 0 : i64, tpu.core_type = #tpu.core_type<tc>} {
    %c0 = arith.constant 0 : index
    %c0_0 = arith.constant 0 : index
    %0 = vector.load %arg0[%c0, %c0_0] : memref<16x128xf32, #tpu.memory_space<vmem>>, vector<16x128xf32>
    %c0_1 = arith.constant 0 : index
    %c0_2 = arith.constant 0 : index
    %1 = vector.load %arg1[%c0_1, %c0_2] : memref<16x128xf32, #tpu.memory_space<vmem>>, vector<16x128xf32>
    %2 = arith.subf %0, %1 : vector<16x128xf32>
    %cst = arith.constant 3.000000e+00 : f32
    %3 = vector.broadcast %cst : f32 to vector<16x128xf32>
    %4 = arith.subf %2, %3 : vector<16x128xf32>
    %c0_3 = arith.constant 0 : index
    %c0_4 = arith.constant 0 : index
    %5 = vector.load %arg2[%c0_3, %c0_4] : memref<16x128xf32, #tpu.memory_space<vmem>>, vector<16x128xf32>
    tpu.vector_store %arg2[%c0_3, %c0_4], %4 {strides = array<i32>} : memref<16x128xf32, #tpu.memory_space<vmem>>, vector<16x128xf32>,
    return
  }
}

</mosaic_0001>

<bundles_post_ra>
// kernel: tpu_custom_call.1
= control target key start
LH: loop header
LB: loop body
LE: loop exit
PB: predicated region body
PF: predicated region fallthrough
CT: control target
= control target key end

     0   :  { %7 = vsyncpa [#allocation3], 0  ;;  %s179_s0 = inlined_call_operand.hbm [shape: f32[16,128], index: 0, kind: input, shape index: {}]   ;;  %s180_s1 = inlined_call_operand.hbm [shape: f32[16,128], index: 1, kind: input, shape index: {}]   ;;  %s181_s2 = inlined_call_operand.hbm [shape: f32[16,128], index: 2, kind: output, shape index: {}]  }
   0x1   :  { %8 = vsyncpa [#allocation6], 0 }
   0x2   :  { %9 = vsyncpa [#allocation4], 0  ;;  %s141_s9 = smov [#allocation2]  }
   0x3   :  { %s15_s10 = sshll.u32 %s141_s9, 4  ;;  %s16_s10 = int_to_ptr.vmem [resolvable:$true] %s15_s10 }
   0x4   :  { %s83_s11 = scalar_lea.vmem %s16_s10, 256  ;;  %p88_p1 = scmp.lt.s32.totalorder %s16_s10, %s16_s10 }
   0x5   :  { %p84_p0 = scmp.ne.s32.totalorder %s16_s10, %s83_s11  ;;  %p89_p2 = scmp.lt.s32.totalorder %s83_s11, %s83_s11 }
   0x7   :  { %p90_p3 = por %p89_p2, %p88_p1 }
   0x9   :  { %p91_p4 = pnand %p90_p3, %p84_p0 }
   0xb   :  { %94 = shalt.err (!%p91_p4)
}
   0xc   :  { %s142_s12 = smov 128   ;;  %s143_s13 = smov 8  }
   0xd   :  { %21 = dma.hbm_to_vmem [thread:$0]  %s179_s0, 256, %s16_s10, [#allocation3], %s142_s12, %s142_s12, %s143_s13  }
   0xe   :  { %s144_s16 = smov [#allocation5]  }
   0xf   :  { %s27_s17 = sshll.u32 %s144_s16, 4  ;;  %s28_s17 = int_to_ptr.vmem [resolvable:$true] %s27_s17 }
  0x10   :  { %s103_s18 = scalar_lea.vmem %s28_s17, 256  ;;  %p108_p6 = scmp.lt.s32.totalorder %s28_s17, %s28_s17 }
  0x11   :  { %p104_p5 = scmp.ne.s32.totalorder %s28_s17, %s103_s18  ;;  %p109_p7 = scmp.lt.s32.totalorder %s103_s18, %s103_s18 }
  0x13   :  { %p110_p8 = por %p109_p7, %p108_p6 }
  0x15   :  { %p111_p9 = pnand %p110_p8, %p104_p5 }
  0x17   :  { %114 = shalt.err (!%p111_p9)
}
  0x18   :  { %33 = dma.hbm_to_vmem [thread:$0]  %s180_s1, 256, %s28_s17, [#allocation6], %s142_s12, %s142_s12, %s143_s13  }
  0x19   :  { %135 = dma.done.wait [#allocation3], 256  }
  0x1a   :  { %136 = vsyncadd [#allocation3], 4294967040 }
  0x1b   :  { %137 = dma.done.wait [#allocation6], 256  }
  0x1c   :  { %138 = vsyncadd [#allocation6], 4294967040  ;;  %v40_v0 = vld [vmem:[#allocation2] sm:$0xff]  ;;  %v42_v1 = vld [vmem:[#allocation5] sm:$0xff]  ;;  %s145_s0 = smov [#allocation7]  }
  0x1d   :  { %v41_v2 = vld [vmem:[#allocation2 + $0x8] sm:$0xff]  ;;  %v44_v3 = vsub.f32 %v40_v0, %v42_v1  ;;  %v43_v4 = vld [vmem:[#allocation5 + $0x8] sm:$0xff]  ;;  %s55_s21 = sshll.u32 %s145_s0, 4  ;;  %s56_s21 = int_to_ptr.vmem [resolvable:$true] %s55_s21 }
  0x1e   :  { %v45_v5 = vsub.f32 %v41_v2, %v43_v4  ;;  %s115_s22 = scalar_lea.vmem %s56_s21, 256  ;;  %p120_p11 = scmp.lt.s32.totalorder %s56_s21, %s56_s21 }
  0x1f   :  { %v68_v6 = vadd.f32 -3.0, %v44_v3  ;;  %p116_p10 = scmp.ne.s32.totalorder %s56_s21, %s115_s22  ;;  %p121_p12 = scmp.lt.s32.totalorder %s115_s22, %s115_s22 }
  0x20   :  { %v69_v7 = vadd.f32 -3.0, %v45_v5 }
  0x21   :  { %48 = vst [vmem:[#allocation7] sm:$0xff] %v68_v6  ;;  %p122_p13 = por %p121_p12, %p120_p11 }
  0x22   :  { %49 = vst [vmem:[#allocation7 + $0x8] sm:$0xff] %v69_v7 }
  0x23   :  { %p123_p0 = pnand %p122_p13, %p116_p10 }
  0x25   :  { %126 = shalt.err (!%p123_p0)
}
  0x26   :  { %61 = dma.vmem_to_hbm [thread:$0]  %s56_s21, 256, %s181_s2, [#allocation4], %s142_s12, %s142_s12, %s143_s13  }
  0x27   :  { %139 = dma.done.wait [#allocation4], 256  }
  0x28   :  { %140 = vsyncadd [#allocation4], 4294967040 }
  0x29   :  { %65 = vsyncpa [#allocation3], 1 }
  0x2a   :  { %66 = vsyncpa [#allocation6], 1 }
  0x2b   :  { %67 = vsyncpa [#allocation4], 1 }

</bundles_post_ra>
